<compile_context>
chip_gen: v6e
topology: v6e:2x2x1
jax: 0.10.0
libtpu: 0.0.40
codegen_flags: <defaults>
</compile_context>

<pallas_src>
import math

import jax
import jax.numpy as jnp
from jax.experimental import pallas as pl
from jax.experimental.pallas import tpu as pltpu


def _segment_bounds(H, P):
    """PyTorch adaptive-pooling segment boundaries along H."""
    return [((i * H) // P, math.ceil((i + 1) * H / P)) for i in range(P)]


def _padded_tile_bytes(sublane_dim, lane_dim, dtype):
    """VMEM bytes of a 2-D tile after (sublane, lane) tiling/padding."""
    itemsize = jnp.dtype(dtype).itemsize
    sub_pack = max(8, 32 // itemsize)            # 8 (f32), 16 (bf16), 32 (i8)
    s = -(-sublane_dim // sub_pack) * sub_pack
    l = -(-lane_dim // 128) * 128
    return s * l * itemsize


def _vmem_capacity_bytes():
    """Per-core VMEM capacity; conservative fallback works on every gen."""
    try:
        cap = int(pltpu.get_tpu_info().vmem_capacity_bytes)
        if cap > 0:
            return cap
    except Exception:
        pass
    return 64 * 1024 * 1024                      # v7x per-TC physical VMEM


def _choose_tiles(N, C, per_nc_bytes, budget_bytes):
    """Pick (tn, tc) so the padded working set fits the budget and the grid
    has enough steps to pipeline DMA and to occupy both v7x TensorCores."""

    def legal_tc(tc):
        if tc >= C:
            return C
        return max(8, (tc // 8) * 8)             # output sublane dim 8-aligned

    max_nc = max(1, budget_bytes // max(1, per_nc_bytes))
    tc = legal_tc(min(C, max_nc))
    tn = max(1, min(N, max_nc // max(1, tc)))

    def steps(a, b):
        return (-(-N // a)) * (-(-C // b))

    while steps(tn, tc) < 8:
        if tn > 1:
            tn = (tn + 1) // 2
        elif tc > 8:
            tc = legal_tc(tc // 2)
        else:
            break
    return tn, tc


def _make_part_pools_kernel(part_nums, methods, H, W, out_dtype):
    """Kernel closed over the static pooling configuration.

    Input block : (tn, tc, H, W)   -- W on lanes, H on sublanes (native NCHW).
    Output block: (tn, tc, R)      -- R = len(methods) * sum(part_nums).
    Row ordering: for P in part_nums -> for m in methods -> for i in range(P).
    """
    need_max = 'max' in methods
    need_avg = 'avg' in methods

    def kernel(x_ref, o_ref):
        x = x_ref[...]                                       # (tn, tc, H, W)

        # Hoisted single pass over W (the lane axis): one max, one f32 sum.
        row_max = jnp.max(x, axis=3) if need_max else None   # (tn, tc, H)
        row_sum = (jnp.sum(x, axis=3, dtype=jnp.float32)     # (tn, tc, H) f32
                   if need_avg else None)

        r = 0
        for P in part_nums:
            bounds = _segment_bounds(H, P)
            pooled = {}
            if need_max:
                pooled['max'] = [
                    jnp.max(row_max[:, :, lo:hi], axis=2) for (lo, hi) in bounds]
            if need_avg:
                pooled['avg'] = [
                    (jnp.sum(row_sum[:, :, lo:hi], axis=2)
                     * (1.0 / float((hi - lo) * W))).astype(out_dtype)
                    for (lo, hi) in bounds]
            for m in methods:
                # Grouped store of this (part_num, method) block of P rows.
                o_ref[:, :, r:r + P] = jnp.stack(
                    [s.astype(out_dtype) for s in pooled[m]], axis=-1)
                r += P

    return kernel


def part_pools(x, part_nums=(1, 2, 3), methods=('max', 'avg')):
    """Pallas implementation of PartPools.forward.

    Returns a nested list: [[pool(x) for m in methods] for P in part_nums],
    each entry of shape (N, C, P, 1), matching AdaptiveMax/AvgPool2d((P, 1)).
    """
    N, C, H, W = x.shape
    R = len(methods) * sum(part_nums)
    dtype = x.dtype
    need_avg = 'avg' in methods

    # ---- padding- and generation-aware VMEM budgeting ----------------------
    vmem_cap = _vmem_capacity_bytes()
    vmem_target = min(vmem_cap // 2, 40 * 1024 * 1024)      # total live target
    in_nc = _padded_tile_bytes(H, W, dtype)
    f32_nc = (_padded_tile_bytes(H, W, jnp.float32)
              if (need_avg and dtype != jnp.float32) else 0)
    per_nc = 2 * in_nc + f32_nc          # double-buffered input + f32 sum temp

    tn, tc = _choose_tiles(N, C, per_nc, vmem_target - (2 << 20))
    grid = (pl.cdiv(N, tn), pl.cdiv(C, tc))

    # Explicit VMEM limit covering the actual padded live set.
    in_block = tn * tc * in_nc
    f32_block = tn * tc * f32_nc
    out_block = tn * _padded_tile_bytes(tc, R, dtype)
    row_tmp = tn * (_padded_tile_bytes(tc, H, jnp.float32)
                    + _padded_tile_bytes(tc, H, dtype))
    needed = 2 * in_block + f32_block + 2 * out_block + row_tmp
    vmem_limit = int(min(vmem_cap, max(needed + (8 << 20), 32 << 20)))

    kernel = _make_part_pools_kernel(part_nums, methods, H, W, dtype)

    cost = pl.CostEstimate(
        flops=int(N * C * H * W * len(methods)),
        transcendentals=0,
        bytes_accessed=int(N * C * H * W * dtype.itemsize
                           + N * C * R * dtype.itemsize),
    )

    slab = pl.pallas_call(
        kernel,
        out_shape=jax.ShapeDtypeStruct((N, C, R), dtype),
        grid=grid,
        in_specs=[pl.BlockSpec((tn, tc, H, W), lambda n, c: (n, c, 0, 0))],
        out_specs=pl.BlockSpec((tn, tc, R), lambda n, c: (n, c, 0)),
        compiler_params=pltpu.CompilerParams(
            dimension_semantics=("parallel", "parallel"),
            vmem_limit_bytes=vmem_limit,
        ),
        cost_estimate=cost,
    )(x)

    # Slice the (N, C, R) slab into the PyTorch nested-list structure.
    result = []
    off = 0
    for P in part_nums:
        sub = []
        for _ in methods:
            sub.append(slab[:, :, off:off + P][..., None])   # (N, C, P, 1)
            off += P
        result.append(sub)
    return result


def _reference(x, part_nums=(1, 2, 3), methods=('max', 'avg')):
    """Pure-JAX reference (adaptive pooling semantics, f32 accumulation)."""
    N, C, H, W = x.shape
    result = []
    for P in part_nums:
        sub = []
        for m in methods:
            rows = []
            for (lo, hi) in _segment_bounds(H, P):
                seg = x[:, :, lo:hi, :]
                if m == 'max':
                    rows.append(jnp.max(seg, axis=(2, 3)))
                else:
                    rows.append(
                        jnp.mean(seg.astype(jnp.float32), axis=(2, 3)).astype(x.dtype))
            sub.append(jnp.stack(rows, axis=-1)[..., None])
        result.append(sub)
    return result


if __name__ == "__main__":
    key = jax.random.PRNGKey(0)
    N, C, H, W = 2, 4, 16, 16
    x = jax.random.normal(key, (N, C, H, W), dtype=jnp.float32)

    part_nums = (1, 2, 3)
    methods = ('max', 'avg')

    outs = part_pools(x, part_nums, methods)
    for sub in outs:
        for o in sub:
            jax.block_until_ready(o)

    refs = _reference(x, part_nums, methods)
    for sub_o, sub_r, P in zip(outs, refs, part_nums):
        for o, r, m in zip(sub_o, sub_r, methods):
            assert o.shape == (N, C, P, 1), (o.shape, P, m)
            assert jnp.allclose(o, r, atol=1e-5, rtol=1e-5), (P, m)

    print("KERNEL_OK")
</pallas_src>

<mosaic_0001>
module attributes {stable_mosaic.version = 11 : i64} {
  func.func @kernel(%arg0: i32, %arg1: i32, %arg2: memref<1x4x16x16xf32, #tpu.memory_space<vmem>>, %arg3: memref<1x4x12xf32, #tpu.memory_space<vmem>>) attributes {dimension_semantics = [#tpu.dimension_semantics<parallel>, #tpu.dimension_semantics<parallel>], iteration_bounds = array<i64: 2, 1>, scalar_prefetch = 0 : i64, scratch_operands = 0 : i64, tpu.core_type = #tpu.core_type<tc>, window_params = [{transform_indices = @transform_0, window_bounds = array<i64: 1, 4, 16, 16>}, {transform_indices = @transform_1, window_bounds = array<i64: 1, 4, 12>}]} {
    %c0 = arith.constant 0 : index
    %c0_0 = arith.constant 0 : index
    %c0_1 = arith.constant 0 : index
    %c0_2 = arith.constant 0 : index
    %0 = vector.load %arg2[%c0, %c0_0, %c0_1, %c0_2] : memref<1x4x16x16xf32, #tpu.memory_space<vmem>>, vector<1x4x16x16xf32>
    %cst = arith.constant dense<0xFF800000> : vector<1x4x16xf32>
    %1 = vector.multi_reduction <maximumf>, %0, %cst [3] : vector<1x4x16x16xf32> to vector<1x4x16xf32>
    %cst_3 = arith.constant dense<0.000000e+00> : vector<1x4x16xf32>
    %2 = vector.multi_reduction <add>, %0, %cst_3 [3] : vector<1x4x16x16xf32> to vector<1x4x16xf32>
    %cst_4 = arith.constant dense<0xFF800000> : vector<1x4xf32>
    %3 = vector.multi_reduction <maximumf>, %1, %cst_4 [2] : vector<1x4x16xf32> to vector<1x4xf32>
    %cst_5 = arith.constant dense<0.000000e+00> : vector<1x4xf32>
    %4 = vector.multi_reduction <add>, %2, %cst_5 [2] : vector<1x4x16xf32> to vector<1x4xf32>
    %cst_6 = arith.constant 3.906250e-03 : f32
    %5 = vector.broadcast %cst_6 : f32 to vector<1x4xf32>
    %6 = arith.mulf %4, %5 : vector<1x4xf32>
    %7 = vector.shape_cast %3 : vector<1x4xf32> to vector<1x4x1xf32>
    %c0_7 = arith.constant 0 : index
    %c0_8 = arith.constant 0 : index
    %c0_9 = arith.constant 0 : index
    %8 = vector.load %arg3[%c0_7, %c0_8, %c0_9] : memref<1x4x12xf32, #tpu.memory_space<vmem>>, vector<1x4x1xf32>
    tpu.vector_store %arg3[%c0_7, %c0_8, %c0_9], %7 {strides = array<i32>} : memref<1x4x12xf32, #tpu.memory_space<vmem>>, vector<1x4x1xf32>,
    %9 = vector.shape_cast %6 : vector<1x4xf32> to vector<1x4x1xf32>
    %c0_10 = arith.constant 0 : index
    %c0_11 = arith.constant 0 : index
    %c1 = arith.constant 1 : index
    %10 = vector.load %arg3[%c0_10, %c0_11, %c1] : memref<1x4x12xf32, #tpu.memory_space<vmem>>, vector<1x4x1xf32>
    tpu.vector_store %arg3[%c0_10, %c0_11, %c1], %9 {strides = array<i32>} : memref<1x4x12xf32, #tpu.memory_space<vmem>>, vector<1x4x1xf32>,
    %11 = vector.extract_strided_slice %1 {offsets = [0, 0, 0], sizes = [1, 4, 8], strides = [1, 1, 1]} : vector<1x4x16xf32> to vector<1x4x8xf32>
    %cst_12 = arith.constant dense<0xFF800000> : vector<1x4xf32>
    %12 = vector.multi_reduction <maximumf>, %11, %cst_12 [2] : vector<1x4x8xf32> to vector<1x4xf32>
    %13 = vector.extract_strided_slice %1 {offsets = [0, 0, 8], sizes = [1, 4, 8], strides = [1, 1, 1]} : vector<1x4x16xf32> to vector<1x4x8xf32>
    %cst_13 = arith.constant dense<0xFF800000> : vector<1x4xf32>
    %14 = vector.multi_reduction <maximumf>, %13, %cst_13 [2] : vector<1x4x8xf32> to vector<1x4xf32>
    %15 = vector.extract_strided_slice %2 {offsets = [0, 0, 0], sizes = [1, 4, 8], strides = [1, 1, 1]} : vector<1x4x16xf32> to vector<1x4x8xf32>
    %cst_14 = arith.constant dense<0.000000e+00> : vector<1x4xf32>
    %16 = vector.multi_reduction <add>, %15, %cst_14 [2] : vector<1x4x8xf32> to vector<1x4xf32>
    %cst_15 = arith.constant 7.812500e-03 : f32
    %17 = vector.broadcast %cst_15 : f32 to vector<1x4xf32>
    %18 = arith.mulf %16, %17 : vector<1x4xf32>
    %19 = vector.extract_strided_slice %2 {offsets = [0, 0, 8], sizes = [1, 4, 8], strides = [1, 1, 1]} : vector<1x4x16xf32> to vector<1x4x8xf32>
    %cst_16 = arith.constant dense<0.000000e+00> : vector<1x4xf32>
    %20 = vector.multi_reduction <add>, %19, %cst_16 [2] : vector<1x4x8xf32> to vector<1x4xf32>
    %cst_17 = arith.constant 7.812500e-03 : f32
    %21 = vector.broadcast %cst_17 : f32 to vector<1x4xf32>
    %22 = arith.mulf %20, %21 : vector<1x4xf32>
    %23 = vector.shape_cast %12 : vector<1x4xf32> to vector<1x4x1xf32>
    %24 = vector.shape_cast %14 : vector<1x4xf32> to vector<1x4x1xf32>
    %25 = tpu.concatenate %23, %24 in 2 : vector<1x4x1xf32>, vector<1x4x1xf32> -> vector<1x4x2xf32>
    %c0_18 = arith.constant 0 : index
    %c0_19 = arith.constant 0 : index
    %c2 = arith.constant 2 : index
    %26 = vector.load %arg3[%c0_18, %c0_19, %c2] : memref<1x4x12xf32, #tpu.memory_space<vmem>>, vector<1x4x2xf32>
    tpu.vector_store %arg3[%c0_18, %c0_19, %c2], %25 {strides = array<i32>} : memref<1x4x12xf32, #tpu.memory_space<vmem>>, vector<1x4x2xf32>,
    %27 = vector.shape_cast %18 : vector<1x4xf32> to vector<1x4x1xf32>
    %28 = vector.shape_cast %22 : vector<1x4xf32> to vector<1x4x1xf32>
    %29 = tpu.concatenate %27, %28 in 2 : vector<1x4x1xf32>, vector<1x4x1xf32> -> vector<1x4x2xf32>
    %c0_20 = arith.constant 0 : index
    %c0_21 = arith.constant 0 : index
    %c4 = arith.constant 4 : index
    %30 = vector.load %arg3[%c0_20, %c0_21, %c4] : memref<1x4x12xf32, #tpu.memory_space<vmem>>, vector<1x4x2xf32>
    tpu.vector_store %arg3[%c0_20, %c0_21, %c4], %29 {strides = array<i32>} : memref<1x4x12xf32, #tpu.memory_space<vmem>>, vector<1x4x2xf32>,
    %31 = vector.extract_strided_slice %1 {offsets = [0, 0, 0], sizes = [1, 4, 6], strides = [1, 1, 1]} : vector<1x4x16xf32> to vector<1x4x6xf32>
    %cst_22 = arith.constant dense<0xFF800000> : vector<1x4xf32>
    %32 = vector.multi_reduction <maximumf>, %31, %cst_22 [2] : vector<1x4x6xf32> to vector<1x4xf32>
    %33 = vector.extract_strided_slice %1 {offsets = [0, 0, 5], sizes = [1, 4, 6], strides = [1, 1, 1]} : vector<1x4x16xf32> to vector<1x4x6xf32>
    %cst_23 = arith.constant dense<0xFF800000> : vector<1x4xf32>
    %34 = vector.multi_reduction <maximumf>, %33, %cst_23 [2] : vector<1x4x6xf32> to vector<1x4xf32>
    %35 = vector.extract_strided_slice %1 {offsets = [0, 0, 10], sizes = [1, 4, 6], strides = [1, 1, 1]} : vector<1x4x16xf32> to vector<1x4x6xf32>
    %cst_24 = arith.constant dense<0xFF800000> : vector<1x4xf32>
    %36 = vector.multi_reduction <maximumf>, %35, %cst_24 [2] : vector<1x4x6xf32> to vector<1x4xf32>
    %37 = vector.extract_strided_slice %2 {offsets = [0, 0, 0], sizes = [1, 4, 6], strides = [1, 1, 1]} : vector<1x4x16xf32> to vector<1x4x6xf32>
    %cst_25 = arith.constant dense<0.000000e+00> : vector<1x4xf32>
    %38 = vector.multi_reduction <add>, %37, %cst_25 [2] : vector<1x4x6xf32> to vector<1x4xf32>
    %cst_26 = arith.constant 0.010416667 : f32
    %39 = vector.broadcast %cst_26 : f32 to vector<1x4xf32>
    %40 = arith.mulf %38, %39 : vector<1x4xf32>
    %41 = vector.extract_strided_slice %2 {offsets = [0, 0, 5], sizes = [1, 4, 6], strides = [1, 1, 1]} : vector<1x4x16xf32> to vector<1x4x6xf32>
    %cst_27 = arith.constant dense<0.000000e+00> : vector<1x4xf32>
    %42 = vector.multi_reduction <add>, %41, %cst_27 [2] : vector<1x4x6xf32> to vector<1x4xf32>
    %cst_28 = arith.constant 0.010416667 : f32
    %43 = vector.broadcast %cst_28 : f32 to vector<1x4xf32>
    %44 = arith.mulf %42, %43 : vector<1x4xf32>
    %45 = vector.extract_strided_slice %2 {offsets = [0, 0, 10], sizes = [1, 4, 6], strides = [1, 1, 1]} : vector<1x4x16xf32> to vector<1x4x6xf32>
    %cst_29 = arith.constant dense<0.000000e+00> : vector<1x4xf32>
    %46 = vector.multi_reduction <add>, %45, %cst_29 [2] : vector<1x4x6xf32> to vector<1x4xf32>
    %cst_30 = arith.constant 0.010416667 : f32
    %47 = vector.broadcast %cst_30 : f32 to vector<1x4xf32>
    %48 = arith.mulf %46, %47 : vector<1x4xf32>
    %49 = vector.shape_cast %32 : vector<1x4xf32> to vector<1x4x1xf32>
    %50 = vector.shape_cast %34 : vector<1x4xf32> to vector<1x4x1xf32>
    %51 = vector.shape_cast %36 : vector<1x4xf32> to vector<1x4x1xf32>
    %52 = tpu.concatenate %49, %50, %51 in 2 : vector<1x4x1xf32>, vector<1x4x1xf32>, vector<1x4x1xf32> -> vector<1x4x3xf32>
    %c0_31 = arith.constant 0 : index
    %c0_32 = arith.constant 0 : index
    %c6 = arith.constant 6 : index
    %53 = vector.load %arg3[%c0_31, %c0_32, %c6] : memref<1x4x12xf32, #tpu.memory_space<vmem>>, vector<1x4x3xf32>
    tpu.vector_store %arg3[%c0_31, %c0_32, %c6], %52 {strides = array<i32>} : memref<1x4x12xf32, #tpu.memory_space<vmem>>, vector<1x4x3xf32>,
    %54 = vector.shape_cast %40 : vector<1x4xf32> to vector<1x4x1xf32>
    %55 = vector.shape_cast %44 : vector<1x4xf32> to vector<1x4x1xf32>
    %56 = vector.shape_cast %48 : vector<1x4xf32> to vector<1x4x1xf32>
    %57 = tpu.concatenate %54, %55, %56 in 2 : vector<1x4x1xf32>, vector<1x4x1xf32>, vector<1x4x1xf32> -> vector<1x4x3xf32>
    %c0_33 = arith.constant 0 : index
    %c0_34 = arith.constant 0 : index
    %c9 = arith.constant 9 : index
    %58 = vector.load %arg3[%c0_33, %c0_34, %c9] : memref<1x4x12xf32, #tpu.memory_space<vmem>>, vector<1x4x3xf32>
    tpu.vector_store %arg3[%c0_33, %c0_34, %c9], %57 {strides = array<i32>} : memref<1x4x12xf32, #tpu.memory_space<vmem>>, vector<1x4x3xf32>,
    return
  }
  func.func @transform_0(%arg0: i32, %arg1: i32) -> (i32, i32, i32, i32) {
    %c0_i32 = arith.constant 0 : i32
    %c0_i32_0 = arith.constant 0 : i32
    %c0_i32_1 = arith.constant 0 : i32
    return %arg0, %arg1, %c0_i32, %c0_i32_0 : i32, i32, i32, i32
  }
  func.func @transform_1(%arg0: i32, %arg1: i32) -> (i32, i32, i32) {
    %c0_i32 = arith.constant 0 : i32
    %c0_i32_0 = arith.constant 0 : i32
    return %arg0, %arg1, %c0_i32 : i32, i32, i32
  }
}

</mosaic_0001>

<bundles_post_ra>
// kernel: tpu_custom_call.1
= control target key start
LH: loop header
LB: loop body
LE: loop exit
PB: predicated region body
PF: predicated region fallthrough
CT: control target
= control target key end

     0   :  { %6 = vsyncpa [#allocation3], 0  ;;  %s1127_s0 = inlined_call_operand.hbm [shape: f32[2,4,16,16], index: 0, kind: input, shape index: {}]   ;;  %s1128_s1 = inlined_call_operand.hbm [shape: f32[2,4,12], index: 1, kind: output, shape index: {}]  }
   0x1   :  { %8 = vsyncpa [#allocation3 + $0x1], 0 }
   0x2   :  { %9 = vsyncpa [#allocation4], 0 }
   0x3   :  { %11 = vsyncpa [#allocation4 + $0x1], 0  ;;  %s818_s6 = smov 0   ;;  %s820_s7 = smov 0  }
   0x4   :  { %s822_s8 = smov 0   ;;  %s824_s9 = smov 0  }
   0x5   :  { %s826_s10 = smov 0   ;;  %s828_s11 = smov 0  }
   0x6 LB: > { %s607_s12 = sadd.s32 4294967295, %s798_s11   ;;  %s608_s13 = sadd.s32 4294967294, %s798_s11   ;;  %s798_s11 = sphi %s828_s11, %s17_s11   ;;  %s794_s10 = sphi %s826_s10, %s1139_s10   ;;  %s790_s9 = sphi %s824_s9, %s1138_s9   ;;  %s786_s8 = sphi %s822_s8, %s1137_s8   ;;  %s782_s7 = sphi %s820_s7, %s1136_s7   ;;  %s778_s6 = sphi %s818_s6, %s1135_s6  }
   0x7   : > { %s29_s14 = sadd.s32 1, %s794_s10  ;;  %s38_s15 = sadd.s32 1, %s786_s8 }
   0x8   : > { %p31_p0 = scmp.ge.s32.totalorder %s29_s14, 2  ;;  %p45_p1 = scmp.ne.s32.totalorder %s786_s8, %s782_s7 }
   0x9   : > { %p46_p2 = scmp.eq.s32.totalorder %s798_s11, 0  ;;  %p51_p3 = scmp.ne.s32.totalorder %s782_s7, %s778_s6 }
   0xa   : > { %s1141_s14 = smov (%p31_p0, %s29_s14), 0  ;;  %p52_p5 = scmp.eq.s32.totalorder %s607_s12, 0 }
   0xb   : > { %p859_p4 = por %p46_p2, %p45_p1  ;;  %s33_s17 = ssub.s32 %s794_s10, %s1141_s14 }
   0xc   : > { %p77_p6 = scmp.eq.s32.totalorder %s607_s12, 1  ;;  %p36_p7 = scmp.eq.s32.totalorder %s33_s17, 0 }
   0xd   : > { %p865_p8 = por %p52_p5, %p51_p3  ;;  %p83_p10 = scmp.eq.s32.totalorder %s608_s13, 1 }
   0xe   : > { %p869_p9 = por %p77_p6, %p45_p1  ;;  %p634_p13 = scmp.lt.s32.totalorder %s798_s11, 2 }
   0xf   : > { %s874_s20 = scalar_select %p36_p7, %s786_s8, %s38_s15  }
  0x10   : > { %p876_p11 = por %p83_p10, %p51_p3  ;;  %s103_s22 = sand.u32 1, %s786_s8  }
  0x11   : > { %s611_s23 = sshll.u32 %s103_s22, 6  ;;  %s621_s24 = sshll.u32 %s794_s10, 10 }
  0x12   : > { %s116_s27 = scalar_lea.hbm %s1127_s0, %s621_s24  ;;  %s107_s28 = scalar_lea.vmem [#allocation2], %s611_s23 }
  0x13   : > { %s117_s29 = sshll.u32 %s107_s28, 4  ;;  %p889_p0 = pnand %p634_p13, %p859_p4  ;;  %s118_s29 = int_to_ptr.vmem [resolvable:$true] %s117_s29 }
  0x14   : > { %p614_p1 = scmp.ge.s32.totalorder %s798_s11, 1  ;;  %s104_s2 = scalar_lea.sflag [#allocation3], %s103_s22 }
  0x15   : > { %p692_p2 = pneg %p889_p0  ;;  %s703_s3 = scalar_lea.vmem %s118_s29, 1024 }
  0x16   : > { %p704_p3 = scmp.ne.s32.totalorder %s118_s29, %s703_s3  ;;  %s800_s4 = smov [#allocation2]  }
  0x17   : > { %s708_s5 = sshll.u32 %s800_s4, 4  ;;  %s709_s5 = int_to_ptr.vmem [resolvable:$false] %s708_s5 }
  0x18   : > { %p706_p5 = pnand %p704_p3, %p692_p2  ;;  %s710_s12 = scalar_lea.vmem %s709_s5, 2048 }
  0x19   : > { %p711_p7 = scmp.lt.s32.totalorder %s118_s29, %s709_s5  ;;  %p712_p10 = scmp.lt.s32.totalorder %s710_s12, %s703_s3 }
  0x1a   : > { %p707_p6 = pneg %p706_p5 }
  0x1b   : > { %p713_p12 = por %p712_p10, %p711_p7 }
  0x1d   : > { %p714_p4 = pnand %p713_p12, %p707_p6 }
  0x1f   : > { %717 = shalt.err (!%p714_p4)
}
  0x20   : > { %s801_s13 = smov 128   ;;  %s802_s15 = smov 8  }
  0x21   : > { %629 = dma.hbm_to_vmem [thread:$0]  (!%p889_p0), %s116_s27, 1024, %s118_s29, %s104_s2, %s801_s13, %s801_s13, %s802_s15  }
  0x22   : > { %p125_p13 = scmp.lt.s32.totalorder %s798_s11, 3 }
  0x24   : > { %p126_p2 = pnand %p614_p1, %p125_p13 }
  0x25   : > { %s902_s16 = sand.u32 (!%p126_p2), 1, %s782_s7  }
  0x26   : > { %129 = sbr.rel (%p126_p2) target bundleno = 499 (0x1f3), region = 24  ;;  %s615_s17 = sshll.u32 (!%p126_p2), %s902_s16, 6 }
  0x27   : > { %s132_s22 = scalar_lea.sflag (!%p126_p2), [#allocation3], %s902_s16  ;;  %s906_s23 = scalar_lea.vmem (!%p126_p2), [#allocation2], %s615_s17 }
  0x2b   : > { %769 = dma.done.wait (%p865_p8), %s132_s22, 1024  }
  0x2c   : > { %771 = vsyncadd (%p865_p8), %s132_s22, 4294966272  ;;  %vm163_vm0 = vcmask 130048   ;;  %v157_v0 = vld [vmem:[%s906_s23 + $0x10] sm:$0xff]  ;;  %v155_v1 = vld [vmem:[%s906_s23] sm:$0xff]  ;;  %v220_v26 = vlaneseq  ;;  %vm260_vm1 = vcmask 1041409   ;;  %vm431_vm2 = vcmask 89112  }
  0x2d   : > { %v158_v2 = vld [vmem:[%s906_s23 + $0x18] sm:$0xff]  ;;  %v194_v3 = vsel %vm163_vm0, %v157_v0, 0.0  ;;  %v188_v4 = vsel %vm163_vm0, %v155_v1, 0.0  ;;  %v156_v5 = vld [vmem:[%s906_s23 + $0x8] sm:$0xff]  ;;  %v164_v9 = vsel %vm163_vm0, %v155_v1, -inf  ;;  %v170_v11 = vsel %vm163_vm0, %v157_v0, -inf }
  0x2e   : > { %195 = vadd.xlane.f32.xlu1 %v194_v3  ;;  %189 = vadd.xlane.f32.xlu0 %v188_v4  ;;  %v197_v6 = vsel %vm163_vm0, %v158_v2, 0.0  ;;  %v191_v7 = vsel %vm163_vm0, %v156_v5, 0.0  ;;  %v167_v8 = vsel %vm163_vm0, %v156_v5, -inf  ;;  %v173_v10 = vsel %vm163_vm0, %v158_v2, -inf  ;;  %v160_v12 = vld [vmem:[%s906_s23 + $0x28] sm:$0xff]  ;;  %v159_v13 = vld [vmem:[%s906_s23 + $0x20] sm:$0xff] }
  0x2f   : > { %v203_v14 = vsel %vm163_vm0, %v160_v12, 0.0  ;;  %v200_v15 = vsel %vm163_vm0, %v159_v13, 0.0  ;;  %v179_v16 = vsel %vm163_vm0, %v160_v12, -inf  ;;  %v176_v17 = vsel %vm163_vm0, %v159_v13, -inf  ;;  %v162_v18 = vld [vmem:[%s906_s23 + $0x38] sm:$0xff]  ;;  %v161_v19 = vld [vmem:[%s906_s23 + $0x30] sm:$0xff] }
  0x30   : > { %v209_v20 = vsel %vm163_vm0, %v162_v18, 0.0  ;;  %v206_v21 = vsel %vm163_vm0, %v161_v19, 0.0  ;;  %v185_v22 = vsel %vm163_vm0, %v162_v18, -inf  ;;  %v182_v23 = vsel %vm163_vm0, %v161_v19, -inf  ;;  %s803_s18 = smov 4   ;;  %s804_s24 = smov 2  }
  0x31   : > { %v221_v29 = vand.u32 127, %v220_v26  ;;  %v223_v32 = vshrl.u32 %v220_v26, 7  ;;  %vm262_vm3 = vcmask 1042434   ;;  %vm264_vm4 = vcmask 1043459   ;;  %s616_s25 = sshll.u32 %s902_s16, 2  ;;  %s805_s26 = smov 6  }
  0x32   : > { %198 = vadd.xlane.f32.xlu1 %v197_v6  ;;  %192 = vadd.xlane.f32.xlu0 %v191_v7  ;;  %vm331_vm5 = vcmask 60416   ;;  %vm231_vm6 = vcmask 130112   ;;  %vm405_vm7 = vcmask 44032   ;;  %vm409_vm8 = vcmask 85032   ;;  %s153_s27 = scalar_lea.vmem [#allocation5], %s616_s25  ;;  %s806_s28 = smov 9  }
  0x33   : > { %v426_v33 = vadd.s32 4294967293, %v221_v29  ;;  %v421_v34 = vadd.s32 5, %v221_v29  ;;  %v944_v37 = vsub.s32 %v221_v29, %v223_v32  ;;  %v226_v39 = vadd.s32 4294967288, %v221_v29  ;;  %s618_s29 = sshll.u32 %s790_s9, 6  ;;  %s525_s30 = sshll.u32 %s153_s27, 4  ;;  %s526_s30 = int_to_ptr.vmem [resolvable:$true] %s525_s30 }
  0x34   : > { %v468_v41 = vadd.s32 2, %v221_v29  ;;  %vm413_vm9 = vcmask 60432   ;;  %vm267_vm10 = vcmask 125952   ;;  %vm390_vm11 = vcmask 7168   ;;  %s1085_s4 = scalar_lea.hbm %s1128_s1, %s618_s29  ;;  %s511_s5 = scalar_lea.sflag [#allocation4], %s902_s16 }
  0x35   : > { %v946_v38 = vsub.s32 %v426_v33, %v223_v32  ;;  %v948_v40 = vsub.s32 %v421_v34, %v223_v32  ;;  %v966_v50 = vsub.s32 %v226_v39, %v223_v32  ;;  %vm494_vm12 = vcmask 15360   ;;  %s718_s12 = scalar_lea.vmem %s526_s30, 64  ;;  %s807_s13 = smov [#allocation5]  }
  0x36   : > { %168 = vmax.xlane.f32.xlu1 %v167_v8  ;;  %165 = vmax.xlane.f32.xlu0 %v164_v9  ;;  %v969_v52 = vsub.s32 %v468_v41, %v223_v32  ;;  %vm323_vm13 = vcmask 3072   ;;  %vm325_vm14 = vcmask 11272   ;;  %vm396_vm15 = vcmask 27664   ;;  %p719_p8 = scmp.ne.s32.totalorder %s526_s30, %s718_s12  ;;  %s722_s15 = sshll.u32 %s807_s13, 4  ;;  %s723_s15 = int_to_ptr.vmem [resolvable:$false] %s722_s15 }
  0x37   : > { %vm403_vm0 = vcmask 44064   ;;  %s724_s9 = scalar_lea.vmem %s723_s15, 128  ;;  %p725_p1 = scmp.lt.s32.totalorder %s526_s30, %s723_s15 }
  0x38   : > { %p720_p12 = pnand %p719_p8, %p869_p9  ;;  %p726_p3 = scmp.lt.s32.totalorder %s724_s9, %s718_s12 }
  0x3a   : > { %174 = vmax.xlane.f32.xlu1 %v173_v10  ;;  %171 = vmax.xlane.f32.xlu0 %v170_v11  ;;  %p721_p0 = pneg %p720_p12  ;;  %p727_p5 = por %p726_p3, %p725_p1 }
  0x3c   : > { %p728_p6 = pnand %p727_p5, %p721_p0 }
  0x3e   : > { %204 = vadd.xlane.f32.xlu1 %v203_v14  ;;  %201 = vadd.xlane.f32.xlu0 %v200_v15 }
  0x42   : > { %180 = vmax.xlane.f32.xlu1 %v179_v16  ;;  %177 = vmax.xlane.f32.xlu0 %v176_v17 }
  0x46   : > { %210 = vadd.xlane.f32.xlu1 %v209_v20  ;;  %207 = vadd.xlane.f32.xlu0 %v206_v21 }
  0x4a   : > { %186 = vmax.xlane.f32.xlu1 %v185_v22  ;;  %183 = vmax.xlane.f32.xlu0 %v182_v23 }
  0xb7   : > { %v196_v24 = vpop.xlane.xlu1 %195  ;;  %v190_v25 = vpop.xlane.xlu0 %189 }
  0xb8   : > { %v953_v44 = vrot.slane %v196_v24, %v944_v37  ;;  %v956_v45 = vrot.slane %v190_v25, %v944_v37  ;;  %v436_v51 = vrot.slane %v196_v24, %v948_v40  ;;  %v425_v55 = vrot.slane %v190_v25, %v948_v40 }
  0xba   : > { %v358_v58 = vsel %vm260_vm1, %v953_v44, %v956_v45 }
  0xbb   : > { %v936_v27 = vpop.xlane.xlu1 %198  ;;  %v938_v28 = vpop.xlane.xlu0 %192 }
  0xbc   : > { %v373_v46 = vrot.slane %v936_v27, %v944_v37  ;;  %v440_v47 = vrot.slane %v936_v27, %v946_v38  ;;  %v369_v48 = vrot.slane %v938_v28, %v944_v37  ;;  %v430_v49 = vrot.slane %v938_v28, %v946_v38 }
  0xbe   : > { %v382_v57 = vsel %vm260_vm1, %v373_v46, %v369_v48  ;;  %v441_v59 = vsel %vm431_vm2, %v440_v47, %v436_v51  ;;  %v432_v63 = vsel %vm431_vm2, %v430_v49, %v425_v55  ;;  %v295_v48 = vrot.slane %v936_v27, %v966_v50 }
  0xbf   : > { %v940_v30 = vpop.xlane.xlu1 %168  ;;  %v166_v31 = vpop.xlane.xlu0 %165  ;;  %v476_v51 = vrot.slane %v936_v27, %v969_v52 }
  0xc0   : > { %v230_v60 = vrot.slane %v940_v30, %v966_v50  ;;  %v338_v0 = vrot.slane %v940_v30, %v944_v37  ;;  %v225_v6 = vrot.slane %v166_v31, %v944_v37 }
  0xc2   : > { %v232_v46 = vsel %vm231_vm6, %v230_v60, %v225_v6 }
  0xc3   : > { %v942_v35 = vpop.xlane.xlu1 %174  ;;  %v172_v36 = vpop.xlane.xlu0 %171 }
  0xc4   : > { %v236_v61 = vrot.slane %v172_v36, %v944_v37  ;;  %v342_v1 = vrot.slane %v942_v35, %v944_v37  ;;  %v240_v14 = vrot.slane %v942_v35, %v966_v50  ;;  %v460_v36 = vsel %vm260_vm1, %v441_v59, %v432_v63 }
  0xc6   : > { %v327_v15 = vsel %vm260_vm1, %v236_v61, %v225_v6  ;;  %v351_v22 = vsel %vm260_vm1, %v342_v1, %v338_v0 }
  0xc7   : > { %v950_v42 = vpop.xlane.xlu1 %204  ;;  %v202_v43 = vpop.xlane.xlu0 %201 }
  0xc8   : > { %v377_v56 = vrot.slane %v950_v42, %v944_v37  ;;  %v983_v62 = vrot.slane %v202_v43, %v944_v37  ;;  %v449_v2 = vrot.slane %v950_v42, %v946_v38  ;;  %v445_v3 = vrot.slane %v202_v43, %v948_v40 }
  0xc9   : > { %v304_v27 = vrot.slane %v950_v42, %v966_v50 }
  0xca   : > { %v383_v9 = vsel %vm262_vm3, %v377_v56, %v382_v57  ;;  %v359_v17 = vsel %vm262_vm3, %v983_v62, %v358_v58  ;;  %v450_v23 = vsel %vm431_vm2, %v449_v2, %v445_v3  ;;  %v286_v56 = vrot.slane %v938_v28, %v966_v50 }
  0xcb   : > { %v181_v53 = vpop.xlane.xlu1 %180  ;;  %v178_v54 = vpop.xlane.xlu0 %177  ;;  %v480_v57 = vrot.slane %v950_v42, %v969_v52  ;;  %v296_v42 = vsel %vm231_vm6, %v295_v48, %v953_v44 }
  0xcc   : > { %v346_v7 = vrot.slane %v181_v53, %v944_v37  ;;  %v245_v10 = vrot.slane %v178_v54, %v944_v37  ;;  %v249_v24 = vrot.slane %v181_v53, %v966_v50  ;;  %v472_v53 = vrot.slane %v938_v28, %v969_v52 }
  0xcd   : > { %v287_v2 = vsel %vm231_vm6, %v286_v56, %v956_v45 }
  0xce   : > { %v352_v31 = vsel %vm262_vm3, %v346_v7, %v351_v22  ;;  %v328_v32 = vsel %vm262_vm3, %v245_v10, %v327_v15  ;;  %v250_v41 = vsel %vm231_vm6, %v249_v24, %v245_v10  ;;  %v485_v28 = vsel %vm260_vm1, %v476_v51, %v472_v53 }
  0xcf   : > { %v993_v4 = vpop.xlane.xlu1 %210  ;;  %v208_v5 = vpop.xlane.xlu0 %207  ;;  %v486_v1 = vsel %vm262_vm3, %v480_v57, %v485_v28 }
  0xd0   : > { %v381_v8 = vrot.slane %v993_v4, %v944_v37  ;;  %v458_v11 = vrot.slane %v993_v4, %v946_v38  ;;  %v1004_v12 = vrot.slane %v208_v5, %v944_v37  ;;  %v454_v13 = vrot.slane %v208_v5, %v948_v40 }
  0xd1   : > { %v461_v40 = vsel %vm262_vm3, %v450_v23, %v460_v36  ;;  %v484_v60 = vrot.slane %v993_v4, %v969_v52  ;;  %v315_v5 = vsel %vm260_vm1, %v296_v42, %v287_v2 }
  0xd2   : > { %v384_v16 = vsel %vm264_vm4, %v381_v8, %v383_v9  ;;  %v360_v21 = vsel %vm264_vm4, %v1004_v12, %v359_v17  ;;  %v459_v33 = vsel %vm431_vm2, %v458_v11, %v454_v13  ;;  %vm508_vm2 = vcmask 93256  }
  0xd3   : > { %v187_v18 = vpop.xlane.xlu1 %186  ;;  %v184_v19 = vpop.xlane.xlu0 %183  ;;  %v386_v20 = vsel %vm331_vm5, %v384_v16, 0.0  ;;  %v362_v29 = vsel %vm331_vm5, %v360_v21, 0.0  ;;  %v462_v43 = vsel %vm264_vm4, %v459_v33, %v461_v40  ;;  %v417_v58 = vsel %vm405_vm7, %v360_v21, 0.0 }
  0xd4   : > { %v350_v25 = vrot.slane %v187_v18, %v944_v37  ;;  %v254_v26 = vrot.slane %v184_v19, %v944_v37  ;;  %387 = vadd.xlane.f32.xlu1 %v386_v20  ;;  %v258_v30 = vrot.slane %v187_v18, %v966_v50  ;;  %363 = vadd.xlane.f32.xlu0 %v362_v29  ;;  %v464_v54 = vsel %vm405_vm7, %v462_v43, 0.0 }
  0xd5   : > { %v241_v37 = vsel %vm231_vm6, %v240_v14, %v236_v61  ;;  %v313_v61 = vrot.slane %v993_v4, %v966_v50  ;;  %v487_v52 = vsel %vm264_vm4, %v484_v60, %v486_v1  ;;  %v305_v50 = vsel %vm231_vm6, %v304_v27, %v983_v62 }
  0xd6   : > { %v353_v34 = vsel %vm264_vm4, %v350_v25, %v352_v31  ;;  %v329_v35 = vsel %vm264_vm4, %v254_v26, %v328_v32  ;;  %v259_v47 = vsel %vm231_vm6, %v258_v30, %v254_v26  ;;  %v261_v49 = vsel %vm260_vm1, %v241_v37, %v232_v46 }
  0xd7   : > { %v355_v38 = vsel %vm331_vm5, %v353_v34, -inf  ;;  %v332_v39 = vsel %vm331_vm5, %v329_v35, -inf  ;;  %v263_v55 = vsel %vm262_vm3, %v250_v41, %v261_v49  ;;  %v406_v0 = vsel %vm405_vm7, %v329_v35, -inf }
  0xd8   : > { %356 = vmax.xlane.f32.xlu1 %v355_v38  ;;  %333 = vmax.xlane.f32.xlu0 %v332_v39  ;;  %v265_v59 = vsel %vm264_vm4, %v259_v47, %v263_v55  ;;  %v314_v3 = vsel %vm231_vm6, %v313_v61, %v1004_v12  ;;  %v414_v4 = vsel %vm413_vm9, %v353_v34, -inf  ;;  %v489_v6 = vsel %vm405_vm7, %v487_v52, 0.0 }
  0xd9   : > { %v410_v63 = vsel %vm409_vm8, %v265_v59, -inf  ;;  %v316_v45 = vsel %vm262_vm3, %v305_v50, %v315_v5  ;;  %v268_v7 = vsel %vm267_vm10, %v265_v59, -inf  ;;  %vm500_vm1 = vcmask 68656  }
  0xda   : > { %v317_v44 = vsel %vm264_vm4, %v314_v3, %v316_v45 }
  0xdb   : > { %v319_v8 = vsel %vm267_vm10, %v317_v44, 0.0 }
  0xdc   : > { %465 = vadd.xlane.f32.xlu1 %v464_v54  ;;  %418 = vadd.xlane.f32.xlu0 %v417_v58 }
  0xe0   : > { %411 = vmax.xlane.f32.xlu1 %v410_v63  ;;  %407 = vmax.xlane.f32.xlu0 %v406_v0 }
  0xe4   : > { %415 = vmax.xlane.f32.xlu1 %v414_v4  ;;  %490 = vadd.xlane.f32.xlu0 %v489_v6 }
  0xe8   : > { %269 = vmax.xlane.f32.xlu1 %v268_v7  ;;  %320 = vadd.xlane.f32.xlu0 %v319_v8 }
 0x15d   : > { %v388_v62 = vpop.xlane.xlu1 %387  ;;  %v364_v10 = vpop.xlane.xlu0 %363 }
 0x15e   : > { %v389_v9 = vmul.f32 0.0078125, %v388_v62  ;;  %v365_v11 = vmul.f32 0.0078125, %v364_v10 }
 0x160   : > { %v398_v13 = vsel %vm390_vm11, %v365_v11, %v389_v9 }
 0x161   : > { %v357_v12 = vpop.xlane.xlu1 %356  ;;  %400 = vrot.lane.b32.xlu1 %v398_v13, %s803_s18  ;;  %v334_v14 = vpop.xlane.xlu0 %333 }
 0x162   : > { %v391_v15 = vsel %vm390_vm11, %v334_v14, %v357_v12 }
 0x163   : > { %393 = vrot.lane.b32.xlu0 %v391_v15, %s804_s24 }
 0x165   : > { %v466_v16 = vpop.xlane.xlu1 %465  ;;  %v419_v17 = vpop.xlane.xlu0 %418 }
 0x166   : > { %v467_v20 = vmul.f32 0.010416667, %v466_v16  ;;  %v420_v21 = vmul.f32 0.010416667, %v419_v17 }
 0x168   : > { %v502_v30 = vsel %vm390_vm11, %v420_v21, %v467_v20 }
 0x169   : > { %v412_v18 = vpop.xlane.xlu1 %411  ;;  %v408_v19 = vpop.xlane.xlu0 %407 }
 0x16a   : > { %v493_v22 = vsel %vm390_vm11, %v408_v19, %v412_v18 }
 0x16d   : > { %v416_v23 = vpop.xlane.xlu1 %415  ;;  %v491_v24 = vpop.xlane.xlu0 %490 }
 0x16e   : > { %v495_v25 = vsel %vm494_vm12, %v493_v22, %v416_v23  ;;  %v492_v26 = vmul.f32 0.010416667, %v491_v24 }
 0x16f   : > { %497 = vrot.lane.b32.xlu1 %v495_v25, %s805_s26 }
 0x170   : > { %v503_v32 = vsel %vm494_vm12, %v502_v30, %v492_v26 }
 0x171   : > { %v270_v29 = vpop.xlane.xlu1 %269  ;;  %v321_v31 = vpop.xlane.xlu0 %320 }
 0x172   : > { %324 = vst.msk [vmem:[%s153_s27] sm:$0xf] %vm323_vm13, %v270_v29  ;;  %v322_v33 = vmul.f32 0.00390625, %v321_v31 }
 0x173   : > { %505 = vrot.lane.b32.xlu1 %v503_v32, %s806_s28 }
 0x174   : > { %326 = vst.msk [vmem:[%s153_s27] sm:$0xf] %vm325_vm14, %v322_v33 }
 0x1d3   : > { %v401_v35 = vpop.permute.xlu1 %400 }
 0x1d5   : > { %v394_v34 = vpop.permute.xlu0 %393 }
 0x1d6   : > { %397 = vst.msk [vmem:[%s153_s27] sm:$0xf] %vm396_vm15, %v394_v34 }
 0x1d7   : > { %404 = vst.msk [vmem:[%s153_s27] sm:$0xf] %vm403_vm0, %v401_v35 }
 0x1e1   : > { %v498_v36 = vpop.permute.xlu1 %497 }
 0x1e2   : > { %501 = vst.msk [vmem:[%s153_s27] sm:$0xf] %vm500_vm1, %v498_v36 }
 0x1e5   : > { %v506_v37 = vpop.permute.xlu1 %505 }
 0x1e6   : > { %509 = vst.msk [vmem:[%s153_s27] sm:$0xf] %vm508_vm2, %v506_v37 }
 0x1e7   : > { %731 = shalt.err (!%p728_p6)
}
 0x1e8   : > { %s732_s17 = scalar_lea.hbm %s1085_s4, 64  ;;  %s736_s23 = scalar_lea.hbm %s1128_s1, 128 }
 0x1e9   : > { %p733_p7 = scmp.ne.s32.totalorder %s1085_s4, %s732_s17  ;;  %p737_p13 = scmp.lt.s32.totalorder %s1085_s4, %s1128_s1 }
 0x1ea   : > { %p738_p2 = scmp.lt.s32.totalorder %s736_s23, %s732_s17 }
 0x1eb   : > { %p734_p10 = pnand %p733_p7, %p869_p9 }
 0x1ec   : > { %p739_p8 = por %p738_p2, %p737_p13 }
 0x1ed   : > { %p735_p4 = pneg %p734_p10 }
 0x1ef   : > { %p740_p12 = pnand %p739_p8, %p735_p4 }
 0x1f1   : > { %743 = shalt.err (!%p740_p12)
}
 0x1f2   : > { %624 = dma.vmem_to_hbm [thread:$0]  (%p869_p9), %s526_s30, 64, %s1085_s4, %s511_s5  }
 0x1f3 PF: > { %s537_s25 = sand.u32 1, %s778_s6   ;;  %p1134_p0 = scmp.ge.s32.totalorder %s798_s11, 2 }
 0x1f4   : > { %s538_s26 = scalar_lea.sflag [#allocation4], %s537_s25 }
 0x1f5   : > { %p631_p1 = pnand %p1134_p0, %p876_p11 }
 0x1f7   : > { %p632_p3 = pneg %p631_p1 }
 0x1f9   : > { %773 = dma.done.wait (%p632_p3), %s538_s26, 64  }
 0x1fa   : > { %775 = vsyncadd (%p632_p3), %s538_s26, 4294967232  ;;  %s17_s11 = sadd.s32 1, %s798_s11   ;;  %s1135_s6 = smov %s782_s7 }
 0x1fb   : > { %p14_p5 = scmp.ge.s32.totalorder %s17_s11, 4   ;;  %s1136_s7 = smov %s786_s8 }
 0x1fc   : > { %s1137_s8 = smov %s874_s20  ;;  %s1138_s9 = smov %s794_s10 }
 0x1fd   : > { %s1139_s10 = smov %s1141_s14  ;;  %16 = sbr.rel (!%p14_p5) target bundleno = 6 (0x6), region = 69 }
 0x202   :  { %543 = vsyncpa [#allocation3], 1 }
 0x203   :  { %545 = vsyncpa [#allocation3 + $0x1], 1 }
 0x204   :  { %546 = vsyncpa [#allocation4], 1 }
 0x205   :  { %548 = vsyncpa [#allocation4 + $0x1], 1 }

</bundles_post_ra>
